<compile_context>
chip_gen: v7x
topology: tpu7x:2x2x1
jax: 0.10.0
libtpu: 0.0.40
codegen_flags: <defaults>
</compile_context>

<pallas_src>
import jax
import jax.numpy as jnp
from jax.experimental import pallas as pl
from jax.experimental.pallas import tpu as pltpu

_LANE = 128     # TPU lane width (last dim)
_SUBLANE = 8    # TPU sublane width (second-to-last dim)


def _round_up(n, m):
    return ((n + m - 1) // m) * m


def _fused_linear_kernel(x_ref, w_ref, b_ref, o_ref):
    # (tile_b, 128) @ (128, 128) on the MXU with f32 accumulation.
    acc = jnp.dot(x_ref[...], w_ref[...], preferred_element_type=jnp.float32)
    # Lane-dense (tile_b, 128) store; padded columns are zeros and get sliced
    # away in the wrapper.
    o_ref[...] = (acc + b_ref[...]).astype(o_ref.dtype)


def top_model_forward(x, w1, b1, w2, b2, *,
                      block_batch=4096, compute_dtype=jnp.bfloat16):
    """TopModel forward: ((x @ w1 + b1) @ w2 + b2), fused into one matmul.

    x:  [batch, input_dim]   (f32)
    w1: [input_dim, hidden]  b1: [1, hidden]
    w2: [hidden, classes]    b2: [1, classes]
    Returns [batch, classes] float32 logits.
    """
    batch, in_dim = x.shape
    num_classes = w2.shape[1]

    # --- One-time algebraic fusion of the two bias-linears (no nonlinearity
    # between them in forward).  In production this would be precomputed once.
    wf = jnp.dot(w1, w2, preferred_element_type=jnp.float32)          # (in_dim, classes)
    bf = jnp.dot(b1, w2, preferred_element_type=jnp.float32) + b2     # (1, classes)

    # --- Pad feature dim 89 -> 128 and class dim 2 -> 128 (lane-dense I/O).
    kp = _round_up(in_dim, _LANE)
    cp = _round_up(num_classes, _LANE)

    # --- Batch tiling: biggest tile that fits comfortably in scoped VMEM,
    # capped at the (sublane-rounded) batch for tiny inputs.
    tile_b = min(block_batch, _round_up(batch, _SUBLANE))
    padded_b = _round_up(batch, tile_b)

    x_p = jnp.pad(x.astype(compute_dtype),
                  ((0, padded_b - batch), (0, kp - in_dim)))           # (padded_b, kp)
    wf_p = jnp.pad(wf.astype(compute_dtype),
                   ((0, kp - in_dim), (0, cp - num_classes)))          # (kp, cp)
    bf_p = jnp.pad(bf, ((0, 0), (0, cp - num_classes)))                # (1, cp) f32

    out_padded = pl.pallas_call(
        _fused_linear_kernel,
        out_shape=jax.ShapeDtypeStruct((padded_b, cp), jnp.float32),
        grid=(padded_b // tile_b,),
        in_specs=[
            pl.BlockSpec((tile_b, kp), lambda i: (i, 0)),   # x tile (pipelined)
            pl.BlockSpec((kp, cp), lambda i: (0, 0)),       # fused weight (resident)
            pl.BlockSpec((1, cp), lambda i: (0, 0)),        # fused bias (resident)
        ],
        out_specs=pl.BlockSpec((tile_b, cp), lambda i: (i, 0)),
        compiler_params=pltpu.CompilerParams(
            # Batch tiles are independent -> shard across v7x's 2 TensorCores.
            dimension_semantics=("parallel",),
        ),
    )(x_p, wf_p, bf_p)

    return out_padded[:batch, :num_classes]


def init_params(key, input_dim=89, hidden=128, num_classes=2):
    """Deterministic parameter init mimicking nn.Linear's uniform scheme."""
    k1, k2, k3, k4 = jax.random.split(key, 4)
    bound1 = 1.0 / jnp.sqrt(input_dim)
    bound2 = 1.0 / jnp.sqrt(hidden)
    # Stored as [in, out] so the kernel computes x @ W (PyTorch stores [out, in]).
    w1 = jax.random.uniform(k1, (input_dim, hidden), jnp.float32, -bound1, bound1)
    b1 = jax.random.uniform(k2, (1, hidden), jnp.float32, -bound1, bound1)
    w2 = jax.random.uniform(k3, (hidden, num_classes), jnp.float32, -bound2, bound2)
    b2 = jax.random.uniform(k4, (1, num_classes), jnp.float32, -bound2, bound2)
    return w1, b1, w2, b2


if __name__ == "__main__":
    key = jax.random.PRNGKey(0)
    k_x, k_p = jax.random.split(key)

    batch, input_dim, hidden, num_classes = 8, 89, 128, 2
    x = jax.random.normal(k_x, (batch, input_dim), jnp.float32)
    w1, b1, w2, b2 = init_params(k_p, input_dim, hidden, num_classes)

    # Pure-JAX reference of the unfused forward pass (f32).
    ref = (x @ w1 + b1) @ w2 + b2

    # Production path: bf16 inputs, f32 accumulate (tolerance loosened for bf16).
    out = top_model_forward(x, w1, b1, w2, b2)
    out = jax.block_until_ready(out)
    assert out.shape == (batch, num_classes)
    assert jnp.allclose(out, ref, atol=5e-2, rtol=5e-2)

    # Full-precision path: fusion alone keeps the original 1e-4 tolerance.
    out_f32 = top_model_forward(x, w1, b1, w2, b2, compute_dtype=jnp.float32)
    out_f32 = jax.block_until_ready(out_f32)
    assert jnp.allclose(out_f32, ref, atol=1e-4, rtol=1e-4)

    print("KERNEL_OK")
</pallas_src>

<mosaic_0001>
module attributes {stable_mosaic.version = 11 : i64} {
  func.func @_fused_linear_kernel(%arg0: i32, %arg1: memref<8x128xbf16, #tpu.memory_space<vmem>>, %arg2: memref<128x128xbf16, #tpu.memory_space<vmem>>, %arg3: memref<1x128xf32, #tpu.memory_space<vmem>>, %arg4: memref<8x128xf32, #tpu.memory_space<vmem>>) attributes {dimension_semantics = [#tpu.dimension_semantics<parallel>], iteration_bounds = array<i64: 1>, scalar_prefetch = 0 : i64, scratch_operands = 0 : i64, tpu.core_type = #tpu.core_type<tc>, window_params = [{transform_indices = @transform_0, window_bounds = array<i64: 8, 128>}, {pipeline_mode = #tpu.pipeline_mode<synchronous>, transform_indices = @transform_1, window_bounds = array<i64: 128, 128>}, {pipeline_mode = #tpu.pipeline_mode<synchronous>, transform_indices = @transform_2, window_bounds = array<i64: 1, 128>}, {transform_indices = @transform_3, window_bounds = array<i64: 8, 128>}]} {
    %c0 = arith.constant 0 : index
    %c0_0 = arith.constant 0 : index
    %0 = vector.load %arg1[%c0, %c0_0] : memref<8x128xbf16, #tpu.memory_space<vmem>>, vector<8x128xbf16>
    %c0_1 = arith.constant 0 : index
    %c0_2 = arith.constant 0 : index
    %1 = vector.load %arg2[%c0_1, %c0_2] : memref<128x128xbf16, #tpu.memory_space<vmem>>, vector<128x128xbf16>
    %cst = arith.constant dense<0.000000e+00> : vector<8x128xf32>
    %2 = tpu.matmul %0, %1, %cst {dimension_numbers = #tpu.dot_dimension_numbers<[1], [0], [0], [1], [0, 0, 1, 1], [], []>} : vector<8x128xbf16>, vector<128x128xbf16>, vector<8x128xf32> -> vector<8x128xf32>
    %c0_3 = arith.constant 0 : index
    %c0_4 = arith.constant 0 : index
    %3 = vector.load %arg3[%c0_3, %c0_4] : memref<1x128xf32, #tpu.memory_space<vmem>>, vector<1x128xf32>
    %4 = vector.broadcast %3 : vector<1x128xf32> to vector<8x128xf32>
    %5 = arith.addf %2, %4 : vector<8x128xf32>
    %c0_5 = arith.constant 0 : index
    %c0_6 = arith.constant 0 : index
    %6 = vector.load %arg4[%c0_5, %c0_6] : memref<8x128xf32, #tpu.memory_space<vmem>>, vector<8x128xf32>
    tpu.vector_store %arg4[%c0_5, %c0_6], %5 {strides = array<i32>} : memref<8x128xf32, #tpu.memory_space<vmem>>, vector<8x128xf32>,
    return
  }
  func.func @transform_0(%arg0: i32) -> (i32, i32) {
    %c0_i32 = arith.constant 0 : i32
    %c0_i32_0 = arith.constant 0 : i32
    return %arg0, %c0_i32 : i32, i32
  }
  func.func @transform_1(%arg0: i32) -> (i32, i32) {
    %c0_i32 = arith.constant 0 : i32
    %c0_i32_0 = arith.constant 0 : i32
    %c0_i32_1 = arith.constant 0 : i32
    return %c0_i32, %c0_i32_0 : i32, i32
  }
  func.func @transform_2(%arg0: i32) -> (i32, i32) {
    %c0_i32 = arith.constant 0 : i32
    %c0_i32_0 = arith.constant 0 : i32
    %c0_i32_1 = arith.constant 0 : i32
    return %c0_i32, %c0_i32_0 : i32, i32
  }
  func.func @transform_3(%arg0: i32) -> (i32, i32) {
    %c0_i32 = arith.constant 0 : i32
    %c0_i32_0 = arith.constant 0 : i32
    return %arg0, %c0_i32 : i32, i32
  }
}

</mosaic_0001>

<bundles_post_ra>
// kernel: tpu_custom_call.1
= control target key start
LH: loop header
LB: loop body
LE: loop exit
PB: predicated region body
PF: predicated region fallthrough
CT: control target
= control target key end

     0   :  { %8 = vsyncpa [#allocation3], 0  ;;  %s369_s0 = inlined_call_operand.hbm [shape: bf16[8,128], index: 0, kind: input, shape index: {}]   ;;  %s370_s1 = inlined_call_operand.hbm [shape: bf16[128,128], index: 1, kind: input, shape index: {}]   ;;  %s371_s2 = inlined_call_operand.vmem [shape: f32[1,128], index: 2, kind: input, shape index: {}]   ;;  %s372_s3 = inlined_call_operand.hbm [shape: f32[8,128], index: 3, kind: output, shape index: {}]  }
   0x1   :  { %9 = vsyncpa [#allocation6], 0 }
   0x2   :  { %10 = vsyncpa [#allocation4], 0  ;;  %s296_s12 = smov [#allocation2]   ;;  %s297_s14 = smov [#allocation5]  }
   0x3   :  { %s17_s13 = sshll.u32 %s296_s12, 4  ;;  %s26_s15 = sshll.u32 %s297_s14, 4  ;;  %s18_s13 = int_to_ptr.vmem [resolvable:$true] %s17_s13  ;;  %s323_s15 = int_to_ptr.vmem [resolvable:$true] %s26_s15 }
   0x4   :  { %s224_s18 = scalar_lea.hbm %s369_s0, 64 }
   0x5   :  { %p225_p0 = scmp.ne.s32.totalorder %s369_s0, %s224_s18  ;;  %p228_p1 = scmp.lt.u32.totalorder %s224_s18, %s369_s0 }
   0x7   :  { %p230_p2 = pnand %p228_p1, %p225_p0 }
   0x9   :  { %233 = shalt.err (!%p230_p2)
}
   0xa   :  { %s234_s23 = scalar_lea.vmem %s18_s13, 64  ;;  %p239_p4 = scmp.lt.s32.totalorder %s18_s13, %s18_s13 }
   0xb   :  { %p235_p3 = scmp.ne.s32.totalorder %s18_s13, %s234_s23  ;;  %p240_p5 = scmp.lt.s32.totalorder %s234_s23, %s234_s23 }
   0xd   :  { %p241_p6 = por %p240_p5, %p239_p4 }
   0xf   :  { %p242_p7 = pnand %p241_p6, %p235_p3 }
  0x11   :  { %245 = shalt.err (!%p242_p7)
}
  0x12   :  { %20 = dma.hbm_to_vmem [thread:$0]  %s369_s0, 64, %s18_s13, [#allocation3]  }
  0x13   :  { %s246_s28 = scalar_lea.hbm %s370_s1, 1024 }
  0x14   :  { %p247_p8 = scmp.ne.s32.totalorder %s370_s1, %s246_s28  ;;  %p250_p9 = scmp.lt.u32.totalorder %s246_s28, %s370_s1 }
  0x16   :  { %p252_p10 = pnand %p250_p9, %p247_p8 }
  0x18   :  { %255 = shalt.err (!%p252_p10)
}
  0x19   :  { %s256_s6 = scalar_lea.vmem %s323_s15, 1024  ;;  %p261_p12 = scmp.lt.s32.totalorder %s323_s15, %s323_s15 }
  0x1a   :  { %p257_p11 = scmp.ne.s32.totalorder %s323_s15, %s256_s6  ;;  %p262_p13 = scmp.lt.s32.totalorder %s256_s6, %s256_s6 }
  0x1c   :  { %p263_p0 = por %p262_p13, %p261_p12 }
  0x1e   :  { %p264_p1 = pnand %p263_p0, %p257_p11 }
  0x20   :  { %267 = shalt.err (!%p264_p1)
}
  0x21   :  { %s298_s0 = smov 64   ;;  %s299_s7 = smov 4  }
  0x22   :  { %32 = dma.hbm_to_vmem [thread:$0]  %s370_s1, 1024, %s323_s15, [#allocation6], %s298_s0, %s298_s0, %s299_s7  }
  0x23   :  { %290 = dma.done.wait [#allocation3], 64  }
  0x24   :  { %291 = vsyncadd [#allocation3], 4294967232 }
  0x25   :  { %292 = dma.done.wait [#allocation6], 1024  }
  0x26   :  { %293 = vsyncadd [#allocation6], 4294966272  ;;  %v300_v0 = vmov 0.0   ;;  %vm301_vm0 = vmmov 0   ;;  %v216_v1 = vld [vmem:[#allocation5] sm:$0xff]   ;;  %v217_v2 = vld [vmem:[#allocation5 + $0x8] sm:$0xff]  }
  0x27   :  { %189 = vmatprep.subr.bf16.mxu0 %v300_v0  ;;  %205 = vmatprep.mubr.msk.bf16.mxu0 %vm301_vm0, %v300_v0  ;;  %v218_v3 = vld [vmem:[#allocation5 + $0x10] sm:$0xff]   ;;  %v219_v4 = vld [vmem:[#allocation5 + $0x18] sm:$0xff]   ;;  %v220_v5 = vld [vmem:[#allocation5 + $0x20] sm:$0xff]   ;;  %s302_s11 = smov [#allocation7]  }
  0x28   :  { %190 = vmatpush3.bf16.msra.mxu0 %v216_v1  ;;  %v221_v6 = vld [vmem:[#allocation5 + $0x28] sm:$0xff]   ;;  %v222_v7 = vld [vmem:[#allocation5 + $0x30] sm:$0xff]   ;;  %v223_v8 = vld [vmem:[#allocation5 + $0x38] sm:$0xff]   ;;  %s161_s12 = sshll.u32 %s302_s11, 4  ;;  %s162_s12 = int_to_ptr.vmem [resolvable:$true] %s161_s12 }
  0x29   :  { %191 = vmatprep.subr.bf16.mxu0 %v300_v0  ;;  %v42_v9 = vld [vmem:[#allocation2] sm:$0xf]  ;;  %s268_s13 = scalar_lea.vmem %s162_s12, 128  ;;  %p273_p3 = scmp.lt.s32.totalorder %s162_s12, %s162_s12 }
  0x2a   :  { %v171_v10 = vld [vmem:[%s371_s2] ss:$0 sm:$0xff]  ;;  %p269_p2 = scmp.ne.s32.totalorder %s162_s12, %s268_s13  ;;  %p274_p4 = scmp.lt.s32.totalorder %s268_s13, %s268_s13 }
  0x2c   :  { %192 = vmatpush3.bf16.msra.mxu0 %v217_v2  ;;  %p275_p5 = por %p274_p4, %p273_p3 }
  0x2d   :  { %193 = vmatprep.subr.bf16.mxu0 %v300_v0 }
  0x2e   :  { %p276_p6 = pnand %p275_p5, %p269_p2 }
  0x30   :  { %194 = vmatpush3.bf16.msra.mxu0 %v218_v3 }
  0x31   :  { %195 = vmatprep.subr.bf16.mxu0 %v300_v0 }
  0x34   :  { %196 = vmatpush3.bf16.msra.mxu0 %v219_v4 }
  0x35   :  { %197 = vmatprep.subr.bf16.mxu0 %v300_v0 }
  0x38   :  { %198 = vmatpush3.bf16.msra.mxu0 %v220_v5 }
  0x39   :  { %199 = vmatprep.subr.bf16.mxu0 %v300_v0 }
  0x3c   :  { %200 = vmatpush3.bf16.msra.mxu0 %v221_v6 }
  0x3d   :  { %201 = vmatprep.subr.bf16.mxu0 %v300_v0 }
  0x40   :  { %202 = vmatpush3.bf16.msra.mxu0 %v222_v7 }
  0x41   :  { %203 = vmatprep.subr.bf16.mxu0 %v300_v0 }
  0x44   :  { %204 = vmatpush3.bf16.msra.mxu0 %v223_v8 }
  0x47   :  { %206 = vmatmul.mubr.bf16.vlgmr.msra.gmra.mrb[0].mxu0 %v42_v9 }
 0x11a   :  { %v148_v11 = vpop.f32.mrb[0].mxu0 }
 0x11b   :  { %v149_v12 = vadd.f32 %v171_v10, %v148_v11  ;;  %v207_v13 = vpop.f32.mrb[1].mxu0 }
 0x11c   :  { %v151_v14 = vpop.f32.mrb[2].mxu0 }
 0x11d   :  { %154 = vst [vmem:[#allocation7] sm:$0xff] %v149_v12  ;;  %v208_v15 = vpop.f32.mrb[3].mxu0 }
 0x11e   :  { %279 = shalt.err (!%p276_p6)
}
 0x11f   :  { %s280_s2 = scalar_lea.hbm %s372_s3, 128 }
 0x120   :  { %p281_p7 = scmp.ne.s32.totalorder %s372_s3, %s280_s2  ;;  %p284_p8 = scmp.lt.u32.totalorder %s280_s2, %s372_s3 }
 0x122   :  { %p286_p9 = pnand %p284_p8, %p281_p7 }
 0x124   :  { %289 = shalt.err (!%p286_p9)
}
 0x125   :  { %164 = dma.vmem_to_hbm [thread:$0]  %s162_s12, 128, %s372_s3, [#allocation4]  }
 0x126   :  { %294 = dma.done.wait [#allocation4], 128  }
 0x127   :  { %295 = vsyncadd [#allocation4], 4294967168 }
 0x128   :  { %168 = vsyncpa [#allocation3], 1 }
 0x129   :  { %169 = vsyncpa [#allocation6], 1 }
 0x12a   :  { %170 = vsyncpa [#allocation4], 1 }

</bundles_post_ra>
